<compile_context>
chip_gen: v7x
topology: tpu7x:2x2x1
jax: 0.10.0
libtpu: 0.0.40
codegen_flags: <defaults>
</compile_context>

<pallas_src>
import numpy as np
import jax
import jax.numpy as jnp
from jax import lax
from jax.experimental import pallas as pl
from jax.experimental.pallas import tpu as pltpu

# ----- hyper-parameters (ConvEncoder defaults) --------------------------------
IN_CH = 4
MID_CH = 16
OUT_CH = 16
HORIZON = 11          # conv spatial length L
KSIZE = 3
N_GROUPS = 8
GN_EPS = 1e-5
BATCH = 8

K1PAD = 16            # K*Cin = 12, zero-padded to a clean 16-wide matmul K dim
assert MID_CH == OUT_CH and MID_CH % N_GROUPS == 0


def _mish(x):
    # mish(x) = x * tanh(softplus(x)); stable softplus (exp/log/tanh -> EUP slot)
    sp = jnp.maximum(x, 0.0) + jnp.log(1.0 + jnp.exp(-jnp.abs(x)))
    return x * jnp.tanh(sp)


# --------------------------------- kernel ------------------------------------
def _conv_encoder_kernel(cols1_ref, slab_ref, out_ref):
    f32 = jnp.float32
    C = MID_CH
    G = N_GROUPS
    cg = C // G
    nl = cols1_ref.shape[1]          # B * L (static at trace time)
    n = nl // HORIZON                # batch
    inv = 1.0 / float(HORIZON * cg)  # GroupNorm averages over L * (C/G) elements

    # ---- static views into the packed parameter/constant slab (free) ---------
    r = 0
    w1 = slab_ref[r:r + C, 0:K1PAD];                 r += C          # (16, 16)
    w2 = slab_ref[r:r + OUT_CH, 0:KSIZE * C];        r += OUT_CH     # (16, 48)
    red2 = slab_ref[r:r + 2 * G, 0:2 * C];           r += 2 * G      # (16, 32)
    exp2 = slab_ref[r:r + 2 * C, 0:2 * G];           r += 2 * C      # (32, 16)
    sel_nm = slab_ref[r:r + n, 0:nl];                r += n          # (n, nl)
    sel_mn = slab_ref[r:r + nl, 0:n];                r += nl         # (nl, n)
    mask_prev = slab_ref[r:r + C, :];                r += C          # 0 where l==0
    mask_next = slab_ref[r:r + C, :];                r += C          # 0 where l==L-1
    b1 = slab_ref[r:r + C, :];                       r += C          # pre-broadcast (C, nl)
    g1 = slab_ref[r:r + C, :];                       r += C
    bt1 = slab_ref[r:r + C, :];                      r += C
    b2 = slab_ref[r:r + C, :];                       r += C
    g2 = slab_ref[r:r + C, :];                       r += C
    bt2 = slab_ref[r:r + C, :];                      r += C

    def group_norm(hf, gamma_b, beta_b):
        # hf: (C, nl) channels-in-sublanes activations.
        # Reduce [x; x^2] over in-group channels then in-sample positions (2 matmuls),
        # broadcast [mean; rstd] back (2 matmuls), fold the affine into scale/shift.
        hcat = jnp.concatenate([hf, hf * hf], axis=0)                     # (2C, nl)
        gboth = jnp.dot(red2, hcat, preferred_element_type=f32)           # (2G, nl)
        sboth = jnp.dot(gboth, sel_mn, preferred_element_type=f32)        # (2G, n)
        mean = sboth[0:G, :] * inv
        ex2 = sboth[G:2 * G, :] * inv
        var = jnp.maximum(ex2 - mean * mean, 0.0)                         # clamp >= 0
        rstd = lax.rsqrt(var + GN_EPS)
        gstat = jnp.concatenate([mean, rstd], axis=0)                     # (2G, n)
        cstat = jnp.dot(exp2, gstat, preferred_element_type=f32)          # (2C, n)
        pstat = jnp.dot(cstat, sel_nm, preferred_element_type=f32)        # (2C, nl)
        scale = pstat[C:2 * C, :] * gamma_b
        shift = beta_b - pstat[0:C, :] * scale
        return hf * scale + shift

    # ---- block: Conv1d(in->mid, k=3, pad=1) as one im2col matmul + GN + Mish -
    h1 = jnp.dot(w1, cols1_ref[...], preferred_element_type=f32) + b1     # (C, nl)
    h1 = _mish(group_norm(h1, g1, bt1))

    # ---- block2: Conv1d(mid->out) via lane-shifted taps, one K=48 matmul -----
    zcol = jnp.zeros((C, 1), f32)
    h1_prev = jnp.concatenate([zcol, h1[:, :nl - 1]], axis=1) * mask_prev  # h1[.., l-1]
    h1_next = jnp.concatenate([h1[:, 1:], zcol], axis=1) * mask_next       # h1[.., l+1]
    cols2 = jnp.concatenate([h1_prev, h1, h1_next], axis=0)                # (3C, nl)
    h2 = jnp.dot(w2, cols2, preferred_element_type=f32) + b2               # (C, nl)
    out_ref[...] = group_norm(h2, g2, bt2)


# ------------------------------ host-side glue --------------------------------
def init_params(key):
    ks = jax.random.split(key, 8)

    def u(k, shape, scale):
        return jax.random.uniform(k, shape, jnp.float32, -scale, scale)

    return {
        "w1": u(ks[0], (MID_CH, IN_CH, KSIZE), 0.30),       # torch Conv1d weight (O, I, K)
        "b1": u(ks[1], (MID_CH,), 0.30),
        "g1": 1.0 + u(ks[2], (MID_CH,), 0.20),              # GroupNorm affine
        "bt1": u(ks[3], (MID_CH,), 0.20),
        "w2": u(ks[4], (OUT_CH, MID_CH, KSIZE), 0.15),
        "b2": u(ks[5], (OUT_CH,), 0.15),
        "g2": 1.0 + u(ks[6], (OUT_CH,), 0.20),
        "bt2": u(ks[7], (OUT_CH,), 0.20),
    }


def _pack_slab(p, batch):
    """Pack conv weights, GroupNorm params (pre-broadcast), one-hot group matrices,
    per-sample selectors and conv2 boundary masks into one (R, B*L) f32 slab."""
    nl = batch * HORIZON
    C, G, cg = MID_CH, N_GROUPS, MID_CH // N_GROUPS
    f32 = jnp.float32

    # conv weights in matmul layout: rows = out-channel, cols = k*Cin_prev + in-channel
    w1m = jnp.transpose(p["w1"], (0, 2, 1)).reshape(C, KSIZE * IN_CH)
    w1m = jnp.pad(w1m, ((0, 0), (0, K1PAD - KSIZE * IN_CH)))                 # (16, 16)
    w2m = jnp.transpose(p["w2"], (0, 2, 1)).reshape(OUT_CH, KSIZE * C)       # (16, 48)

    ch = np.arange(C)
    red_gc = (ch[None, :] // cg == np.arange(G)[:, None]).astype(np.float32)  # (G, C)
    z_gc = np.zeros_like(red_gc)
    red2 = np.block([[red_gc, z_gc], [z_gc, red_gc]])                         # (2G, 2C)
    exp_cg = red_gc.T                                                         # (C, G)
    z_cg = np.zeros_like(exp_cg)
    exp2 = np.block([[exp_cg, z_cg], [z_cg, exp_cg]])                         # (2C, 2G)

    pos = np.arange(nl)
    sel_nm = (pos[None, :] // HORIZON ==
              np.arange(batch)[:, None]).astype(np.float32)                   # (B, nl)
    sel_mn = sel_nm.T                                                         # (nl, B)
    mask_prev = np.broadcast_to((pos % HORIZON != 0).astype(np.float32), (C, nl))
    mask_next = np.broadcast_to((pos % HORIZON != HORIZON - 1).astype(np.float32), (C, nl))

    def lanepad(a):
        a = jnp.asarray(a, f32)
        return jnp.pad(a, ((0, 0), (0, nl - a.shape[1])))

    def bcast(v):  # per-channel vector -> (C, nl) pre-broadcast block
        return jnp.broadcast_to(jnp.asarray(v, f32)[:, None], (C, nl))

    blocks = [
        lanepad(w1m), lanepad(w2m), lanepad(red2), lanepad(exp2),
        lanepad(sel_nm), lanepad(sel_mn),
        jnp.asarray(mask_prev, f32), jnp.asarray(mask_next, f32),
        bcast(p["b1"]), bcast(p["g1"]), bcast(p["bt1"]),
        bcast(p["b2"]), bcast(p["g2"]), bcast(p["bt2"]),
    ]
    return jnp.concatenate(blocks, axis=0)                                    # (304, nl)


def conv_encoder_forward(x, params):
    b = x.shape[0]
    x = x.reshape(b, IN_CH, -1).astype(jnp.float32)          # as in torch forward()
    L = x.shape[-1]
    assert L == HORIZON
    nl = b * L
    # TODO(synk): the noise_ft > 0 branch (additive noise on channels 16:52) is not
    # implemented; the module default is noise_ft=0 and that slice is empty at Cin=4.

    # host-side im2col (layout plumbing): channels-in-sublanes (K*Cin -> 16, B*L) slab
    xpad = jnp.pad(x, ((0, 0), (0, 0), (1, 1)))                               # (B, Cin, L+2)
    taps = jnp.stack([xpad[:, :, k:k + L] for k in range(KSIZE)], axis=0)     # (K, B, Cin, L)
    cols1 = jnp.transpose(taps, (0, 2, 1, 3)).reshape(KSIZE * IN_CH, nl)      # (K*Cin, B*L)
    cols1 = jnp.pad(cols1, ((0, K1PAD - KSIZE * IN_CH), (0, 0)))              # (16, B*L)

    slab = _pack_slab(params, b)

    vmem = pltpu.MemorySpace.VMEM
    out_cf = pl.pallas_call(
        _conv_encoder_kernel,
        out_shape=jax.ShapeDtypeStruct((OUT_CH, nl), jnp.float32),
        in_specs=[pl.BlockSpec(memory_space=vmem), pl.BlockSpec(memory_space=vmem)],
        out_specs=pl.BlockSpec(memory_space=vmem),
    )(cols1, slab)
    # (C_out, B*L) -> torch layout (B, C_out, L)
    return jnp.transpose(out_cf.reshape(OUT_CH, b, L), (1, 0, 2))


# ------------------------- pure-JAX reference (torch layout) ------------------
def reference_forward(x, p):
    b = x.shape[0]
    h = x.reshape(b, IN_CH, -1).astype(jnp.float32)

    def conv1d(a, w, bias):
        out = lax.conv_general_dilated(a, w, window_strides=(1,),
                                       padding=((KSIZE // 2, KSIZE // 2),),
                                       dimension_numbers=("NCH", "OIH", "NCH"))
        return out + bias[None, :, None]

    def group_norm(a, gamma, beta_):
        n, cch, l = a.shape
        ag = a.reshape(n, N_GROUPS, (cch // N_GROUPS) * l)
        m = ag.mean(-1, keepdims=True)
        v = ((ag - m) ** 2).mean(-1, keepdims=True)
        ag = (ag - m) / jnp.sqrt(v + GN_EPS)
        return ag.reshape(n, cch, l) * gamma[None, :, None] + beta_[None, :, None]

    def mish(a):
        sp = jnp.maximum(a, 0.0) + jnp.log(1.0 + jnp.exp(-jnp.abs(a)))
        return a * jnp.tanh(sp)

    h = mish(group_norm(conv1d(h, p["w1"], p["b1"]), p["g1"], p["bt1"]))
    h = group_norm(conv1d(h, p["w2"], p["b2"]), p["g2"], p["bt2"])
    return h


if __name__ == "__main__":
    key = jax.random.PRNGKey(0)
    kx, kp = jax.random.split(key, 2)
    x = jax.random.normal(kx, (BATCH, IN_CH, HORIZON), jnp.float32)
    params = init_params(kp)

    fwd = jax.jit(conv_encoder_forward)
    out = jax.block_until_ready(fwd(x, params))
    ref = reference_forward(x, params)

    assert out.shape == (BATCH, OUT_CH, HORIZON)
    err = jnp.max(jnp.abs(out - ref))
    assert jnp.allclose(out, ref, atol=5e-3, rtol=5e-3), \
        f"mismatch vs reference, max|err|={err}"
    print("KERNEL_OK")
</pallas_src>

<mosaic_0001>
module attributes {stable_mosaic.version = 11 : i64} {
  func.func @_conv_encoder_kernel(%arg0: memref<16x88xf32, #tpu.memory_space<vmem>>, %arg1: memref<304x88xf32, #tpu.memory_space<vmem>>, %arg2: memref<16x88xf32, #tpu.memory_space<vmem>>) attributes {dimension_semantics = [], scalar_prefetch = 0 : i64, scratch_operands = 0 : i64, tpu.core_type = #tpu.core_type<tc>} {
    %c0 = arith.constant 0 : index
    %c0_0 = arith.constant 0 : index
    %0 = vector.load %arg1[%c0, %c0_0] : memref<304x88xf32, #tpu.memory_space<vmem>>, vector<16x16xf32>
    %c16 = arith.constant 16 : index
    %c0_1 = arith.constant 0 : index
    %1 = vector.load %arg1[%c16, %c0_1] : memref<304x88xf32, #tpu.memory_space<vmem>>, vector<16x48xf32>
    %c32 = arith.constant 32 : index
    %c0_2 = arith.constant 0 : index
    %2 = vector.load %arg1[%c32, %c0_2] : memref<304x88xf32, #tpu.memory_space<vmem>>, vector<16x32xf32>
    %c48 = arith.constant 48 : index
    %c0_3 = arith.constant 0 : index
    %3 = vector.load %arg1[%c48, %c0_3] : memref<304x88xf32, #tpu.memory_space<vmem>>, vector<32x16xf32>
    %c80 = arith.constant 80 : index
    %c0_4 = arith.constant 0 : index
    %4 = vector.load %arg1[%c80, %c0_4] : memref<304x88xf32, #tpu.memory_space<vmem>>, vector<8x88xf32>
    %c88 = arith.constant 88 : index
    %c0_5 = arith.constant 0 : index
    %5 = vector.load %arg1[%c88, %c0_5] : memref<304x88xf32, #tpu.memory_space<vmem>>, vector<88x8xf32>
    %c176 = arith.constant 176 : index
    %c0_6 = arith.constant 0 : index
    %6 = vector.load %arg1[%c176, %c0_6] : memref<304x88xf32, #tpu.memory_space<vmem>>, vector<16x88xf32>
    %c192 = arith.constant 192 : index
    %c0_7 = arith.constant 0 : index
    %7 = vector.load %arg1[%c192, %c0_7] : memref<304x88xf32, #tpu.memory_space<vmem>>, vector<16x88xf32>
    %c208 = arith.constant 208 : index
    %c0_8 = arith.constant 0 : index
    %8 = vector.load %arg1[%c208, %c0_8] : memref<304x88xf32, #tpu.memory_space<vmem>>, vector<16x88xf32>
    %c224 = arith.constant 224 : index
    %c0_9 = arith.constant 0 : index
    %9 = vector.load %arg1[%c224, %c0_9] : memref<304x88xf32, #tpu.memory_space<vmem>>, vector<16x88xf32>
    %c240 = arith.constant 240 : index
    %c0_10 = arith.constant 0 : index
    %10 = vector.load %arg1[%c240, %c0_10] : memref<304x88xf32, #tpu.memory_space<vmem>>, vector<16x88xf32>
    %c256 = arith.constant 256 : index
    %c0_11 = arith.constant 0 : index
    %11 = vector.load %arg1[%c256, %c0_11] : memref<304x88xf32, #tpu.memory_space<vmem>>, vector<16x88xf32>
    %c272 = arith.constant 272 : index
    %c0_12 = arith.constant 0 : index
    %12 = vector.load %arg1[%c272, %c0_12] : memref<304x88xf32, #tpu.memory_space<vmem>>, vector<16x88xf32>
    %c288 = arith.constant 288 : index
    %c0_13 = arith.constant 0 : index
    %13 = vector.load %arg1[%c288, %c0_13] : memref<304x88xf32, #tpu.memory_space<vmem>>, vector<16x88xf32>
    %c0_14 = arith.constant 0 : index
    %c0_15 = arith.constant 0 : index
    %14 = vector.load %arg0[%c0_14, %c0_15] : memref<16x88xf32, #tpu.memory_space<vmem>>, vector<16x88xf32>
    %cst = arith.constant dense<0.000000e+00> : vector<16x88xf32>
    %15 = tpu.matmul %0, %14, %cst {dimension_numbers = #tpu.dot_dimension_numbers<[1], [0], [0], [1], [0, 0, 1, 1], [], []>} : vector<16x16xf32>, vector<16x88xf32>, vector<16x88xf32> -> vector<16x88xf32>
    %16 = arith.addf %15, %8 : vector<16x88xf32>
    %17 = arith.mulf %16, %16 : vector<16x88xf32>
    %18 = tpu.concatenate %16, %17 in 0 : vector<16x88xf32>, vector<16x88xf32> -> vector<32x88xf32>
    %cst_16 = arith.constant dense<0.000000e+00> : vector<16x88xf32>
    %19 = tpu.matmul %2, %18, %cst_16 {dimension_numbers = #tpu.dot_dimension_numbers<[1], [0], [0], [1], [0, 0, 1, 1], [], []>} : vector<16x32xf32>, vector<32x88xf32>, vector<16x88xf32> -> vector<16x88xf32>
    %cst_17 = arith.constant dense<0.000000e+00> : vector<16x8xf32>
    %20 = tpu.matmul %19, %5, %cst_17 {dimension_numbers = #tpu.dot_dimension_numbers<[1], [0], [0], [1], [0, 0, 1, 1], [], []>} : vector<16x88xf32>, vector<88x8xf32>, vector<16x8xf32> -> vector<16x8xf32>
    %21 = vector.extract_strided_slice %20 {offsets = [0, 0], sizes = [8, 8], strides = [1, 1]} : vector<16x8xf32> to vector<8x8xf32>
    %cst_18 = arith.constant 0.0454545468 : f32
    %22 = vector.broadcast %cst_18 : f32 to vector<8x8xf32>
    %23 = arith.mulf %21, %22 : vector<8x8xf32>
    %24 = vector.extract_strided_slice %20 {offsets = [8, 0], sizes = [8, 8], strides = [1, 1]} : vector<16x8xf32> to vector<8x8xf32>
    %cst_19 = arith.constant 0.0454545468 : f32
    %25 = vector.broadcast %cst_19 : f32 to vector<8x8xf32>
    %26 = arith.mulf %24, %25 : vector<8x8xf32>
    %27 = arith.mulf %23, %23 : vector<8x8xf32>
    %28 = arith.subf %26, %27 : vector<8x8xf32>
    %cst_20 = arith.constant 0.000000e+00 : f32
    %29 = vector.broadcast %cst_20 : f32 to vector<8x8xf32>
    %30 = arith.maximumf %28, %29 : vector<8x8xf32>
    %cst_21 = arith.constant 9.99999974E-6 : f32
    %31 = vector.broadcast %cst_21 : f32 to vector<8x8xf32>
    %32 = arith.addf %30, %31 : vector<8x8xf32>
    %33 = math.rsqrt %32 : vector<8x8xf32>
    %34 = tpu.concatenate %23, %33 in 0 : vector<8x8xf32>, vector<8x8xf32> -> vector<16x8xf32>
    %cst_22 = arith.constant dense<0.000000e+00> : vector<32x8xf32>
    %35 = tpu.matmul %3, %34, %cst_22 {dimension_numbers = #tpu.dot_dimension_numbers<[1], [0], [0], [1], [0, 0, 1, 1], [], []>} : vector<32x16xf32>, vector<16x8xf32>, vector<32x8xf32> -> vector<32x8xf32>
    %cst_23 = arith.constant dense<0.000000e+00> : vector<32x88xf32>
    %36 = tpu.matmul %35, %4, %cst_23 {dimension_numbers = #tpu.dot_dimension_numbers<[1], [0], [0], [1], [0, 0, 1, 1], [], []>} : vector<32x8xf32>, vector<8x88xf32>, vector<32x88xf32> -> vector<32x88xf32>
    %37 = vector.extract_strided_slice %36 {offsets = [16, 0], sizes = [16, 88], strides = [1, 1]} : vector<32x88xf32> to vector<16x88xf32>
    %38 = arith.mulf %37, %9 : vector<16x88xf32>
    %39 = vector.extract_strided_slice %36 {offsets = [0, 0], sizes = [16, 88], strides = [1, 1]} : vector<32x88xf32> to vector<16x88xf32>
    %40 = arith.mulf %39, %38 : vector<16x88xf32>
    %41 = arith.subf %10, %40 : vector<16x88xf32>
    %42 = arith.mulf %16, %38 : vector<16x88xf32>
    %43 = arith.addf %42, %41 : vector<16x88xf32>
    %cst_24 = arith.constant 0.000000e+00 : f32
    %44 = vector.broadcast %cst_24 : f32 to vector<16x88xf32>
    %45 = arith.maximumf %43, %44 : vector<16x88xf32>
    %46 = math.absf %43 : vector<16x88xf32>
    %cst_25 = arith.constant 0.000000e+00 : f32
    %47 = vector.broadcast %cst_25 : f32 to vector<16x88xf32>
    %48 = arith.subf %47, %46 : vector<16x88xf32>
    %49 = math.exp %48 : vector<16x88xf32>
    %cst_26 = arith.constant 1.000000e+00 : f32
    %50 = vector.broadcast %cst_26 : f32 to vector<16x88xf32>
    %51 = arith.addf %50, %49 : vector<16x88xf32>
    %52 = math.log %51 : vector<16x88xf32>
    %53 = arith.addf %45, %52 : vector<16x88xf32>
    %54 = math.tanh %53 : vector<16x88xf32>
    %55 = arith.mulf %43, %54 : vector<16x88xf32>
    %cst_27 = arith.constant 0.000000e+00 : f32
    %56 = vector.broadcast %cst_27 : f32 to vector<16x1xf32>
    %57 = vector.extract_strided_slice %55 {offsets = [0, 0], sizes = [16, 87], strides = [1, 1]} : vector<16x88xf32> to vector<16x87xf32>
    %58 = tpu.concatenate %56, %57 in 1 : vector<16x1xf32>, vector<16x87xf32> -> vector<16x88xf32>
    %59 = arith.mulf %58, %6 : vector<16x88xf32>
    %60 = vector.extract_strided_slice %55 {offsets = [0, 1], sizes = [16, 87], strides = [1, 1]} : vector<16x88xf32> to vector<16x87xf32>
    %61 = tpu.concatenate %60, %56 in 1 : vector<16x87xf32>, vector<16x1xf32> -> vector<16x88xf32>
    %62 = arith.mulf %61, %7 : vector<16x88xf32>
    %63 = tpu.concatenate %59, %55, %62 in 0 : vector<16x88xf32>, vector<16x88xf32>, vector<16x88xf32> -> vector<48x88xf32>
    %cst_28 = arith.constant dense<0.000000e+00> : vector<16x88xf32>
    %64 = tpu.matmul %1, %63, %cst_28 {dimension_numbers = #tpu.dot_dimension_numbers<[1], [0], [0], [1], [0, 0, 1, 1], [], []>} : vector<16x48xf32>, vector<48x88xf32>, vector<16x88xf32> -> vector<16x88xf32>
    %65 = arith.addf %64, %11 : vector<16x88xf32>
    %66 = arith.mulf %65, %65 : vector<16x88xf32>
    %67 = tpu.concatenate %65, %66 in 0 : vector<16x88xf32>, vector<16x88xf32> -> vector<32x88xf32>
    %cst_29 = arith.constant dense<0.000000e+00> : vector<16x88xf32>
    %68 = tpu.matmul %2, %67, %cst_29 {dimension_numbers = #tpu.dot_dimension_numbers<[1], [0], [0], [1], [0, 0, 1, 1], [], []>} : vector<16x32xf32>, vector<32x88xf32>, vector<16x88xf32> -> vector<16x88xf32>
    %cst_30 = arith.constant dense<0.000000e+00> : vector<16x8xf32>
    %69 = tpu.matmul %68, %5, %cst_30 {dimension_numbers = #tpu.dot_dimension_numbers<[1], [0], [0], [1], [0, 0, 1, 1], [], []>} : vector<16x88xf32>, vector<88x8xf32>, vector<16x8xf32> -> vector<16x8xf32>
    %70 = vector.extract_strided_slice %69 {offsets = [0, 0], sizes = [8, 8], strides = [1, 1]} : vector<16x8xf32> to vector<8x8xf32>
    %cst_31 = arith.constant 0.0454545468 : f32
    %71 = vector.broadcast %cst_31 : f32 to vector<8x8xf32>
    %72 = arith.mulf %70, %71 : vector<8x8xf32>
    %73 = vector.extract_strided_slice %69 {offsets = [8, 0], sizes = [8, 8], strides = [1, 1]} : vector<16x8xf32> to vector<8x8xf32>
    %cst_32 = arith.constant 0.0454545468 : f32
    %74 = vector.broadcast %cst_32 : f32 to vector<8x8xf32>
    %75 = arith.mulf %73, %74 : vector<8x8xf32>
    %76 = arith.mulf %72, %72 : vector<8x8xf32>
    %77 = arith.subf %75, %76 : vector<8x8xf32>
    %cst_33 = arith.constant 0.000000e+00 : f32
    %78 = vector.broadcast %cst_33 : f32 to vector<8x8xf32>
    %79 = arith.maximumf %77, %78 : vector<8x8xf32>
    %cst_34 = arith.constant 9.99999974E-6 : f32
    %80 = vector.broadcast %cst_34 : f32 to vector<8x8xf32>
    %81 = arith.addf %79, %80 : vector<8x8xf32>
    %82 = math.rsqrt %81 : vector<8x8xf32>
    %83 = tpu.concatenate %72, %82 in 0 : vector<8x8xf32>, vector<8x8xf32> -> vector<16x8xf32>
    %cst_35 = arith.constant dense<0.000000e+00> : vector<32x8xf32>
    %84 = tpu.matmul %3, %83, %cst_35 {dimension_numbers = #tpu.dot_dimension_numbers<[1], [0], [0], [1], [0, 0, 1, 1], [], []>} : vector<32x16xf32>, vector<16x8xf32>, vector<32x8xf32> -> vector<32x8xf32>
    %cst_36 = arith.constant dense<0.000000e+00> : vector<32x88xf32>
    %85 = tpu.matmul %84, %4, %cst_36 {dimension_numbers = #tpu.dot_dimension_numbers<[1], [0], [0], [1], [0, 0, 1, 1], [], []>} : vector<32x8xf32>, vector<8x88xf32>, vector<32x88xf32> -> vector<32x88xf32>
    %86 = vector.extract_strided_slice %85 {offsets = [16, 0], sizes = [16, 88], strides = [1, 1]} : vector<32x88xf32> to vector<16x88xf32>
    %87 = arith.mulf %86, %12 : vector<16x88xf32>
    %88 = vector.extract_strided_slice %85 {offsets = [0, 0], sizes = [16, 88], strides = [1, 1]} : vector<32x88xf32> to vector<16x88xf32>
    %89 = arith.mulf %88, %87 : vector<16x88xf32>
    %90 = arith.subf %13, %89 : vector<16x88xf32>
    %91 = arith.mulf %65, %87 : vector<16x88xf32>
    %92 = arith.addf %91, %90 : vector<16x88xf32>
    %c0_37 = arith.constant 0 : index
    %c0_38 = arith.constant 0 : index
    %93 = vector.load %arg2[%c0_37, %c0_38] : memref<16x88xf32, #tpu.memory_space<vmem>>, vector<16x88xf32>
    tpu.vector_store %arg2[%c0_37, %c0_38], %92 {strides = array<i32>} : memref<16x88xf32, #tpu.memory_space<vmem>>, vector<16x88xf32>,
    return
  }
}

</mosaic_0001>

<bundles_post_ra>
// kernel: conv_encoder_forward.1
= control target key start
LH: loop header
LB: loop body
LE: loop exit
PB: predicated region body
PF: predicated region fallthrough
CT: control target
= control target key end

     0   :  { %vm51_vm0 = vcmask 130048   ;;  %vm135_vm1 = vcmask 261120   ;;  %vm217_vm2 = vcmask 719872   ;;  %vm403_vm3 = vcmask 64512   ;;  %s1330_s7 = smov 127   ;;  %s1331_s8 = smov 1   ;;  %s1577_s0 = inlined_call_operand.vmem [shape: f32[16,88], index: 0, kind: input, shape index: {}]   ;;  %s1578_s1 = inlined_call_operand.vmem [shape: f32[304,88], index: 1, kind: input, shape index: {}]   ;;  %s1579_s2 = inlined_call_operand.vmem [shape: f32[16,88], index: 2, kind: output, shape index: {}]  }
   0x1   :  { %v49_v0 = vld [vmem:[%s1577_s0] sm:$0xff]  ;;  %v50_v1 = vld [vmem:[%s1577_s0 + $0x8] sm:$0xff]  ;;  %v22_v6 = vld [vmem:[%s1578_s1 + $0x58] sm:$0xff]  ;;  %vm557_vm4 = vcmask 392192   ;;  %vm541_vm5 = vcmask 7168   ;;  %vm552_vm6 = vcmask 711680  }
   0x2   :  { %v11_v2 = vld [vmem:[%s1578_s1] sm:$0xff]  ;;  %v1232_v3 = vpack.c.bf16 %v50_v1, %v49_v0  ;;  %v12_v4 = vld [vmem:[%s1578_s1 + $0x8] sm:$0xff]  ;;  %v25_v10 = vld [vmem:[%s1578_s1 + $0x70] sm:$0xff] }
   0x3   :  { %1106 = vmatprep.mubr.msk.f32.mxu0 %vm51_vm0, %v11_v2  ;;  %v15_v5 = vld [vmem:[%s1578_s1 + $0x20] sm:$0xff]  ;;  %v24_v8 = vld [vmem:[%s1578_s1 + $0x68] sm:$0xff]  ;;  %v26_v12 = vld [vmem:[%s1578_s1 + $0x78] sm:$0xff] }
   0x4   :  { %1233 = vmatprep.subr.bf16.mxu0 %v1232_v3  ;;  %1117 = vmatprep.mubr.msk.f32.mxu1 %vm135_vm1, %v15_v5  ;;  %v23_v7 = vld [vmem:[%s1578_s1 + $0x60] sm:$0xff]  ;;  %v1379_v11 = vpack.c.bf16 %v25_v10, %v24_v8  ;;  %v28_v15 = vld [vmem:[%s1578_s1 + $0x88] sm:$0xff]  ;;  %v29_v16 = vld [vmem:[%s1578_s1 + $0x90] sm:$0xff] }
   0x5   :  { %1235 = vmatpush3.bf16.msra.mxu0 %v1232_v3  ;;  %v1374_v9 = vpack.c.bf16 %v23_v7, %v22_v6  ;;  %v27_v13 = vld [vmem:[%s1578_s1 + $0x80] sm:$0xff]  ;;  %v1400_v17 = vpack.c.bf16 %v29_v16, %v28_v15  ;;  %v30_v18 = vld [vmem:[%s1578_s1 + $0x98] sm:$0xff]  ;;  %v37_v22 = vld [vmem:[%s1578_s1 + $0xd0] sm:$0xff] }
   0x6   :  { %v1390_v14 = vpack.c.bf16 %v27_v13, %v26_v12  ;;  %v31_v19 = vld [vmem:[%s1578_s1 + $0xa0] sm:$0xff]  ;;  %v38_v21 = vld [vmem:[%s1578_s1 + $0xd8] sm:$0xff]  ;;  %v1434_v31 = vld [vmem:[%s1578_s1 + $0x28] sm:$0xff] }
   0x7   :  { %1245 = vmatprep.subr.bf16.mxu0 %v1374_v9  ;;  %v1410_v20 = vpack.c.bf16 %v31_v19, %v30_v18  ;;  %v1441_v32 = vld [vmem:[%s1578_s1 + $0xa8] sm:$0xff]  ;;  %v1451_v35 = vld [vmem:[%s1578_s1 + $0x30] sm:$0xff]  ;;  %v1463_v47 = vld [vmem:[%s1578_s1 + $0x38] sm:$0xff] }
   0x8   :  { %1107 = vmatmul.mubr.msk.f32.vlgmr.msra.gmra.mrb[0].mxu0 %vm51_vm0, %v12_v4  ;;  %v1458_v46 = vld [vmem:[%s1578_s1 + $0x50] sm:$0xff]  ;;  %v1468_v48 = vld [vmem:[%s1578_s1 + $0x40] sm:$0xff]  ;;  %v1478_v49 = vld [vmem:[%s1578_s1 + $0x48] sm:$0xff] }
   0x9   :  { %1247 = vmatpush3.bf16.msra.mxu0 %v1374_v9  ;;  %v40_v56 = vld [vmem:[%s1578_s1 + $0xe8] sm:$0xff]  ;;  %v39_v57 = vld [vmem:[%s1578_s1 + $0xe0] sm:$0xff]  ;;  %v42_v61 = vld [vmem:[%s1578_s1 + $0xf8] sm:$0xff] }
   0xa   :  { %1249 = vmatprep.subr.bf16.mxu0 %v1379_v11  ;;  %v41_v0 = vld [vmem:[%s1578_s1 + $0xf0] sm:$0xff] }
   0xd   :  { %1251 = vmatpush3.bf16.msra.mxu0 %v1379_v11 }
   0xe   :  { %1253 = vmatprep.subr.bf16.mxu0 %v1390_v14 }
  0x11   :  { %1255 = vmatpush3.bf16.msra.mxu0 %v1390_v14 }
  0x12   :  { %1257 = vmatprep.subr.bf16.mxu0 %v1400_v17 }
  0x15   :  { %1259 = vmatpush3.bf16.msra.mxu0 %v1400_v17 }
  0x16   :  { %1261 = vmatprep.subr.bf16.mxu0 %v1410_v20 }
  0x19   :  { %1263 = vmatpush3.bf16.msra.mxu0 %v1410_v20 }
  0x1a   :  { %1140 = vmatprep.subr.mxu0 %v1441_v32 }
  0x1d   :  { %1141 = vmatpush3.msra.mxu0 %v1441_v32 }
  0xdb   :  { %v1108_v23 = vpop.f32.mrb[0].mxu0 }
  0xdc   :  { %v1421_v24 = vadd.f32 %v1108_v23, %v38_v21  ;;  %v124_v25 = vpop.f32.mrb[1].mxu0 }
  0xdd   :  { %v1423_v26 = vadd.f32 %v124_v25, %v37_v22 }
  0xde   :  { %v134_v27 = vmul.f32 %v1421_v24, %v1421_v24 }
  0xdf   :  { %v133_v28 = vmul.f32 %v1423_v26, %v1423_v26  ;;  %v1236_v29 = vpack.c.bf16 %v1421_v24, %v1423_v26 }
  0xe1   :  { %1237 = vmatprep.subr.bf16.mxu1 %v1236_v29  ;;  %v1240_v30 = vpack.c.bf16 %v134_v27, %v133_v28 }
  0xe2   :  { %1239 = vmatpush3.bf16.msra.mxu1 %v1236_v29 }
  0xe3   :  { %1241 = vmatprep.subr.bf16.mxu1 %v1240_v30 }
  0xe6   :  { %1243 = vmatpush3.bf16.msra.mxu1 %v1240_v30 }
  0xe9   :  { %1118 = vmatmul.mubr.msk.f32.vlgmr.msra.gmra.mrb[0].mxu1 %vm135_vm1, %v1434_v31 }
  0xea   :  { %1149 = vmatprep.mubr.msk.f32.mxu1 %vm51_vm0, %v1451_v35 }
 0x1bc   :  { %v1119_v33 = vpop.f32.mrb[0].mxu1 }
 0x1bd   :  { %v208_v34 = vpop.f32.mrb[1].mxu1 }
 0x1be   :  { %1142 = vmatprep.mubr.msk.f32.mxu0 %vm217_vm2, %v208_v34 }
 0x1bf   :  { %1143 = vmatmul.mubr.msk.f32.vlgmr.msra.gmra.mrb[2].mxu0 %vm217_vm2, %v1119_v33 }
 0x1c0   :  { %1186 = vmatprep.mubr.msk.f32.mxu0 %vm135_vm1, %v15_v5 }
 0x292   :  { %v1144_v36 = vpop.f32.mrb[2].mxu0 }
 0x293   :  { %v290_v37 = vpop.f32.mrb[3].mxu0  ;;  %v300_v39 = vmul.f32 0.045454547, %v1144_v36 }
 0x294   :  { %v299_v38 = vmul.f32 0.045454547, %v290_v37 }
 0x296   :  { %v301_v40 = vmul.f32 %v299_v38, %v299_v38 }
 0x298   :  { %v302_v41 = vsub.f32 %v300_v39, %v301_v40  ;;  %v13_v39 = vld [vmem:[%s1578_s1 + $0x10] sm:$0xff] }
 0x29a   :  { %v303_v42 = vmax.f32 %v302_v41, 0.0 }
 0x29c   :  { %v304_v43 = vadd.f32 1e-05, %v303_v42  ;;  %v33_v42 = vld [vmem:[%s1578_s1 + $0xb0] sm:$0xff] }
 0x29e   :  { %1314 = vrsqrt.f32 %v304_v43 }
 0x2a8   :  { %v1315_v44 = vpop.eup %1314 }
 0x2a9   :  { %v1264_v45 = vpack.c.bf16 %v1315_v44, %v299_v38  ;;  %v34_v44 = vld [vmem:[%s1578_s1 + $0xb8] sm:$0xff] }
 0x2ab   :  { %1265 = vmatprep.subr.bf16.mxu1 %v1264_v45 }
 0x2ac   :  { %1267 = vmatpush3.bf16.msra.mxu1 %v1264_v45 }
 0x2ad   :  { %1155 = vmatprep.subr.mxu1 %v1458_v46 }
 0x2af   :  { %1150 = vmatmul.mubr.msk.f32.vlgmr.msra.gmra.mrb[2].mxu1 %vm51_vm0, %v1463_v47 }
 0x2b0   :  { %1152 = vmatprep.mubr.msk.f32.mxu1 %vm51_vm0, %v1468_v48  ;;  %1156 = vmatpush3.msra.mxu1 %v1458_v46 }
 0x2b3   :  { %1153 = vmatmul.mubr.msk.f32.gmra.mrb[4].mxu1 %vm51_vm0, %v1478_v49 }
 0x382   :  { %v1151_v50 = vpop.f32.mrb[2].mxu1 }
 0x383   :  { %v384_v51 = vpop.f32.mrb[3].mxu1 }
 0x384   :  { %1157 = vmatprep.mubr.msk.f32.mxu1 %vm403_vm3, %v384_v51 }
 0x385   :  { %1158 = vmatmul.mubr.msk.f32.vlgmr.msra.gmra.mrb[6].mxu1 %vm403_vm3, %v1151_v50 }
 0x386   :  { %v1154_v52 = vpop.f32.mrb[4].mxu1 }
 0x387   :  { %v394_v53 = vpop.f32.mrb[5].mxu1 }
 0x388   :  { %1160 = vmatprep.mubr.msk.f32.mxu1 %vm403_vm3, %v394_v53 }
 0x389   :  { %1161 = vmatmul.mubr.msk.f32.gmra.mrb[8].mxu1 %vm403_vm3, %v1154_v52 }
 0x38a   :  { %1175 = vmatprep.mubr.msk.f32.mxu1 %vm557_vm4, %v13_v39 }
 0x458   :  { %v1159_v54 = vpop.f32.mrb[6].mxu1 }
 0x459   :  { %v482_v55 = vpop.f32.mrb[7].mxu1 }
 0x45c   :  { %v1162_v58 = vpop.f32.mrb[8].mxu1 }
 0x45d   :  { %v502_v59 = vmul.f32 %v1162_v58, %v40_v56  ;;  %v492_v60 = vpop.f32.mrb[9].mxu1 }
 0x45e   :  { %v501_v62 = vmul.f32 %v492_v60, %v39_v57  ;;  %v35_v57 = vld [vmem:[%s1578_s1 + $0xc0] sm:$0xff] }
 0x45f   :  { %v504_v63 = vmul.f32 %v1159_v54, %v502_v59  ;;  %v508_v3 = vmul.f32 %v502_v59, %v1421_v24  ;;  %v36_v54 = vld [vmem:[%s1578_s1 + $0xc8] sm:$0xff] }
 0x460   :  { %v503_v1 = vmul.f32 %v501_v62, %v482_v55  ;;  %v507_v5 = vmul.f32 %v501_v62, %v1423_v26  ;;  %v14_v62 = vld [vmem:[%s1578_s1 + $0x18] sm:$0xff] }
 0x461   :  { %v506_v2 = vsub.f32 %v42_v61, %v504_v63 }
 0x462   :  { %v505_v4 = vsub.f32 %v41_v0, %v503_v1 }
 0x463   :  { %v510_v6 = vadd.f32 %v508_v3, %v506_v2 }
 0x464   :  { %v509_v7 = vadd.f32 %v507_v5, %v505_v4 }
 0x465   :  { %v514_v8 = vand.u32 2147483647, %v510_v6  ;;  %v512_v25 = vmax.f32 %v510_v6, 0.0 }
 0x466   :  { %v513_v10 = vand.u32 2147483647, %v509_v7  ;;  %v511_v27 = vmax.f32 %v509_v7, 0.0 }
 0x467   :  { %v516_v12 = vsub.f32 0.0, %v514_v8 }
 0x468   :  { %v515_v13 = vsub.f32 0.0, %v513_v10 }
 0x469   :  { %v519_v15 = vmul.f32 1.442695, %v516_v12 }
 0x46a   :  { %v517_v16 = vmul.f32 1.442695, %v515_v13 }
 0x46b   :  { %1316 = vpow2.f32 %v519_v15 }
 0x46c   :  { %1318 = vpow2.f32 %v517_v16 }
 0x475   :  { %v1317_v18 = vpop.eup %1316 }
 0x476   :  { %v1319_v19 = vpop.eup %1318  ;;  %v522_v21 = vadd.f32 1.0, %v1317_v18 }
 0x477   :  { %v521_v22 = vadd.f32 1.0, %v1319_v19 }
 0x478   :  { %1320 = vlog2.f32 %v522_v21 }
 0x479   :  { %1322 = vlog2.f32 %v521_v22 }
 0x482   :  { %v1321_v23 = vpop.eup %1320 }
 0x483   :  { %v1323_v24 = vpop.eup %1322  ;;  %v526_v26 = vmul.f32 0.6931472, %v1321_v23 }
 0x484   :  { %v524_v28 = vmul.f32 0.6931472, %v1323_v24 }
 0x485   :  { %v528_v29 = vadd.f32 %v526_v26, %v512_v25  ;;  %v48_v25 = vld [vmem:[%s1578_s1 + $0x128] sm:$0xff] }
 0x486   :  { %v527_v30 = vadd.f32 %v524_v28, %v511_v27  ;;  %v47_v28 = vld [vmem:[%s1578_s1 + $0x120] sm:$0xff] }
 0x487   :  { %1324 = vtanh.f32 %v528_v29 }
 0x488   :  { %1326 = vtanh.f32 %v527_v30 }
 0x491   :  { %v1325_v33 = vpop.eup %1324 }
 0x492   :  { %v1327_v34 = vpop.eup %1326  ;;  %v532_v36 = vmul.f32 %v1325_v33, %v510_v6 }
 0x493   :  { %v531_v37 = vmul.f32 %v1327_v34, %v509_v7 }
 0x495   :  { %546 = vrot.lane.b32.xlu1 %v531_v37, %s1330_s7  ;;  %535 = vrot.lane.b32.xlu0 %v531_v37, %s1331_s8  ;;  %v1272_v38 = vpack.c.bf16 %v532_v36, %v531_v37 }
 0x499   :  { %548 = vrot.lane.b32.xlu1 %v532_v36, %s1330_s7  ;;  %537 = vrot.lane.b32.xlu0 %v532_v36, %s1331_s8 }
 0x507   :  { %v547_v40 = vpop.permute.xlu1 %546  ;;  %v536_v41 = vpop.permute.xlu0 %535 }
 0x508   :  { %v542_v43 = vsel %vm541_vm5, 0.0, %v536_v41  ;;  %v553_v58 = vsel %vm552_vm6, %v547_v40, 0.0 }
 0x509   :  { %v544_v52 = vmul.f32 %v542_v43, %v33_v42  ;;  %v555_v60 = vmul.f32 %v553_v58, %v35_v57 }
 0x50b   :  { %v549_v45 = vpop.permute.xlu1 %548  ;;  %v538_v50 = vpop.permute.xlu0 %537 }
 0x50c   :  { %v543_v51 = vsel %vm541_vm5, 0.0, %v538_v50  ;;  %v554_v55 = vsel %vm552_vm6, %v549_v45, 0.0 }
 0x50d   :  { %v545_v53 = vmul.f32 %v543_v51, %v34_v44  ;;  %v556_v59 = vmul.f32 %v554_v55, %v36_v54 }
 0x50f   :  { %v1268_v56 = vpack.c.bf16 %v545_v53, %v544_v52  ;;  %v1276_v61 = vpack.c.bf16 %v556_v59, %v555_v60 }
 0x511   :  { %1269 = vmatprep.subr.bf16.mxu1 %v1268_v56 }
 0x512   :  { %1271 = vmatpush3.bf16.msra.mxu1 %v1268_v56 }
 0x513   :  { %1273 = vmatprep.subr.bf16.mxu1 %v1272_v38 }
 0x516   :  { %1275 = vmatpush3.bf16.msra.mxu1 %v1272_v38 }
 0x517   :  { %1277 = vmatprep.subr.bf16.mxu1 %v1276_v61 }
 0x51a   :  { %1279 = vmatpush3.bf16.msra.mxu1 %v1276_v61 }
 0x51b   :  { %1289 = vmatprep.subr.bf16.mxu1 %v1374_v9 }
 0x51d   :  { %1176 = vmatmul.mubr.msk.f32.vlgmr.msra.gmra.mrb[10].mxu1 %vm557_vm4, %v14_v62 }
 0x51e   :  { %1291 = vmatpush3.bf16.msra.mxu1 %v1374_v9  ;;  %v44_v9 = vld [vmem:[%s1578_s1 + $0x108] sm:$0xff] }
 0x51f   :  { %1293 = vmatprep.subr.bf16.mxu1 %v1379_v11 }
 0x522   :  { %1295 = vmatpush3.bf16.msra.mxu1 %v1379_v11  ;;  %v43_v11 = vld [vmem:[%s1578_s1 + $0x100] sm:$0xff] }
 0x523   :  { %1297 = vmatprep.subr.bf16.mxu1 %v1390_v14 }
 0x526   :  { %1299 = vmatpush3.bf16.msra.mxu1 %v1390_v14 }
 0x527   :  { %1301 = vmatprep.subr.bf16.mxu1 %v1400_v17 }
 0x52a   :  { %1303 = vmatpush3.bf16.msra.mxu1 %v1400_v17 }
 0x52b   :  { %1305 = vmatprep.subr.bf16.mxu1 %v1410_v20 }
 0x52e   :  { %1307 = vmatpush3.bf16.msra.mxu1 %v1410_v20 }
 0x52f   :  { %1209 = vmatprep.subr.mxu1 %v1441_v32 }
 0x532   :  { %1210 = vmatpush3.msra.mxu1 %v1441_v32 }
 0x5f0   :  { %v1177_v14 = vpop.f32.mrb[10].mxu1 }
 0x5f1   :  { %v636_v63 = vadd.f32 %v1177_v14, %v44_v9  ;;  %v630_v0 = vpop.f32.mrb[11].mxu1 }
 0x5f2   :  { %v631_v17 = vadd.f32 %v630_v0, %v43_v11 }
 0x5f3   :  { %v640_v1 = vmul.f32 %v636_v63, %v636_v63 }
 0x5f4   :  { %v639_v2 = vmul.f32 %v631_v17, %v631_v17  ;;  %v1280_v3 = vpack.c.bf16 %v636_v63, %v631_v17 }
 0x5f6   :  { %1281 = vmatprep.subr.bf16.mxu0 %v1280_v3  ;;  %v1284_v20 = vpack.c.bf16 %v640_v1, %v639_v2 }
 0x5f7   :  { %1283 = vmatpush3.bf16.msra.mxu0 %v1280_v3 }
 0x5f8   :  { %1285 = vmatprep.subr.bf16.mxu0 %v1284_v20 }
 0x5fb   :  { %1287 = vmatpush3.bf16.msra.mxu0 %v1284_v20 }
 0x5fe   :  { %1187 = vmatmul.mubr.msk.f32.vlgmr.msra.gmra.mrb[4].mxu0 %vm135_vm1, %v1434_v31 }
 0x5ff   :  { %1218 = vmatprep.mubr.msk.f32.mxu0 %vm51_vm0, %v1451_v35 }
 0x6d1   :  { %v1188_v32 = vpop.f32.mrb[4].mxu0 }
 0x6d2   :  { %v707_v4 = vpop.f32.mrb[5].mxu0 }
 0x6d3   :  { %1211 = vmatprep.mubr.msk.f32.mxu1 %vm217_vm2, %v707_v4 }
 0x6d4   :  { %1212 = vmatmul.mubr.msk.f32.vlgmr.msra.gmra.mrb[12].mxu1 %vm217_vm2, %v1188_v32 }
 0x7a7   :  { %v1213_v5 = vpop.f32.mrb[12].mxu1 }
 0x7a8   :  { %v788_v6 = vpop.f32.mrb[13].mxu1  ;;  %v798_v8 = vmul.f32 0.045454547, %v1213_v5 }
 0x7a9   :  { %v797_v7 = vmul.f32 0.045454547, %v788_v6 }
 0x7ab   :  { %v799_v10 = vmul.f32 %v797_v7, %v797_v7 }
 0x7ad   :  { %v800_v12 = vsub.f32 %v798_v8, %v799_v10 }
 0x7af   :  { %v801_v13 = vmax.f32 %v800_v12, 0.0 }
 0x7b1   :  { %v802_v15 = vadd.f32 1e-05, %v801_v13 }
 0x7b3   :  { %1328 = vrsqrt.f32 %v802_v15 }
 0x7bd   :  { %v1329_v16 = vpop.eup %1328 }
 0x7be   :  { %v1308_v31 = vpack.c.bf16 %v1329_v16, %v797_v7 }
 0x7c0   :  { %1309 = vmatprep.subr.bf16.mxu0 %v1308_v31 }
 0x7c1   :  { %1311 = vmatpush3.bf16.msra.mxu0 %v1308_v31 }
 0x7c2   :  { %1224 = vmatprep.subr.mxu0 %v1458_v46 }
 0x7c4   :  { %1219 = vmatmul.mubr.msk.f32.vlgmr.msra.gmra.mrb[6].mxu0 %vm51_vm0, %v1463_v47 }
 0x7c5   :  { %1221 = vmatprep.mubr.msk.f32.mxu0 %vm51_vm0, %v1468_v48  ;;  %1225 = vmatpush3.msra.mxu0 %v1458_v46  ;;  %v46_v46 = vld [vmem:[%s1578_s1 + $0x118] sm:$0xff]  ;;  %v45_v48 = vld [vmem:[%s1578_s1 + $0x110] sm:$0xff] }
 0x7c8   :  { %1222 = vmatmul.mubr.msk.f32.gmra.mrb[8].mxu0 %vm51_vm0, %v1478_v49 }
 0x897   :  { %v1220_v35 = vpop.f32.mrb[6].mxu0 }
 0x898   :  { %v870_v18 = vpop.f32.mrb[7].mxu0 }
 0x899   :  { %1226 = vmatprep.mubr.msk.f32.mxu0 %vm403_vm3, %v870_v18 }
 0x89a   :  { %1227 = vmatmul.mubr.msk.f32.vlgmr.msra.gmra.mrb[10].mxu0 %vm403_vm3, %v1220_v35 }
 0x89b   :  { %v1223_v19 = vpop.f32.mrb[8].mxu0 }
 0x89c   :  { %v880_v21 = vpop.f32.mrb[9].mxu0 }
 0x89d   :  { %1229 = vmatprep.mubr.msk.f32.mxu0 %vm403_vm3, %v880_v21 }
 0x89e   :  { %1230 = vmatmul.mubr.msk.f32.gmra.mrb[12].mxu0 %vm403_vm3, %v1223_v19 }
 0x96d   :  { %v1228_v47 = vpop.f32.mrb[10].mxu0 }
 0x96e   :  { %v967_v22 = vpop.f32.mrb[11].mxu0 }
 0x971   :  { %v1231_v49 = vpop.f32.mrb[12].mxu0 }
 0x972   :  { %v987_v23 = vmul.f32 %v1231_v49, %v46_v46  ;;  %v977_v24 = vpop.f32.mrb[13].mxu0 }
 0x973   :  { %v986_v26 = vmul.f32 %v977_v24, %v45_v48 }
 0x974   :  { %v989_v27 = vmul.f32 %v1228_v47, %v987_v23  ;;  %v993_v33 = vmul.f32 %v987_v23, %v636_v63 }
 0x975   :  { %v988_v29 = vmul.f32 %v986_v26, %v967_v22  ;;  %v992_v36 = vmul.f32 %v986_v26, %v631_v17 }
 0x976   :  { %v991_v30 = vsub.f32 %v48_v25, %v989_v27 }
 0x977   :  { %v990_v34 = vsub.f32 %v47_v28, %v988_v29 }
 0x978   :  { %v995_v37 = vadd.f32 %v993_v33, %v991_v30 }
 0x979   :  { %v994_v38 = vadd.f32 %v992_v36, %v990_v34 }
 0x97a   :  { %997 = vst.msk [vmem:[%s1579_s2 + $0x8] sm:$0xff] %vm217_vm2, %v995_v37 }
 0x97b   :  { %996 = vst.msk [vmem:[%s1579_s2] sm:$0xff] %vm217_vm2, %v994_v38 }

</bundles_post_ra>
